<compile_context>
chip_gen: v7x
topology: tpu7x:2x2x1
jax: 0.10.0
libtpu: 0.0.40
codegen_flags: <defaults>
</compile_context>

<pallas_src>
import jax
import jax.numpy as jnp
from jax.experimental import pallas as pl
from jax.experimental.pallas import tpu as pltpu


# ----------------------------------------------------------------------------
# Host-side helpers: pooling matrices, block-diagonals, parameter slab packing
# ----------------------------------------------------------------------------
def _make_pool_matrix(n_src, n_nei):
    """(n_src, n_nei) matrix with 1/K entries so P @ nei == per-node mean."""
    assert n_nei % n_src == 0, "neighbor count must be a multiple of src count"
    k = n_nei // n_src
    eye = jnp.eye(n_src, dtype=jnp.float32)
    return jnp.repeat(eye, k, axis=1) * (1.0 / k)


def _block_diag(blocks):
    rows = sum(b.shape[0] for b in blocks)
    cols = sum(b.shape[1] for b in blocks)
    out = jnp.zeros((rows, cols), jnp.float32)
    r = c = 0
    for b in blocks:
        out = out.at[r:r + b.shape[0], c:c + b.shape[1]].set(b)
        r += b.shape[0]
        c += b.shape[1]
    return out


def _pack_slab(arrays):
    """Pack 2-D f32 arrays into one slab.

    Each component starts at a row offset that is a multiple of 8 (sublane
    aligned) and is zero-padded on the lane axis to the common slab width.
    Returns (slab, metas) with metas[i] = (row_start, rows, cols) — all static
    Python ints, so the kernel can carve views with static slices.
    """
    width = max(a.shape[1] for a in arrays)
    pieces, metas, row = [], [], 0
    for a in arrays:
        r, c = a.shape
        pieces.append(jnp.pad(a.astype(jnp.float32), ((0, 0), (0, width - c))))
        metas.append((row, r, c))
        r_pad = (-r) % 8
        if r_pad:
            pieces.append(jnp.zeros((r_pad, width), jnp.float32))
        row += r + r_pad
    return jnp.concatenate(pieces, axis=0), metas


def prepare_inputs(params, node_counts, num_layers, hidden_dim):
    """Precompute block-diagonal pooling / weight matrices and pack them into
    one parameter slab (done once, outside the kernel)."""
    pools, w_bds = [], []
    cnts = list(node_counts)
    for l in range(num_layers):
        # One block-diagonal pooling matrix covering every hop of this layer.
        pools.append(_block_diag(
            [_make_pool_matrix(cnts[h], cnts[h + 1]) for h in range(len(cnts) - 1)]))
        # [[W_self, 0], [0, W_agg]]  (2*in_dim_l, 2*hidden_dim)
        w_bds.append(_block_diag([params["conv"][l]["w_self"],
                                  params["conv"][l]["w_agg"]]))
        cnts = cnts[:-1]
    components = pools + w_bds + [params["fc_w"], params["fc_b"]]
    slab, metas_list = _pack_slab(components)
    metas = {
        "pool": metas_list[:num_layers],
        "w_bd": metas_list[num_layers:2 * num_layers],
        "fc_w": metas_list[2 * num_layers],
        "fc_b": metas_list[2 * num_layers + 1],
    }
    return slab, metas


# ----------------------------------------------------------------------------
# Single fused kernel: all GraphSAGE layers (all hops stacked) + softmax head
# ----------------------------------------------------------------------------
def _build_fused_classifier_kernel(num_layers, node_counts, metas):
    L = num_layers

    def read(param_ref, meta):
        r0, r, c = meta                      # static ints -> static slices
        return param_ref[r0:r0 + r, 0:c]

    def kernel(feat_ref, param_ref, out_ref):
        # feat_ref: vstack of node_feat_list, shape (sum(node_counts), in_dim)
        h = feat_ref[...]
        cnts = list(node_counts)
        for l in range(L):
            n_first = cnts[0]
            n_src = sum(cnts[:-1])           # rows of every source hop
            total = sum(cnts)
            src = h[0:n_src, :]              # vstack(hidden[0..last-1])
            nei = h[n_first:total, :]        # vstack(hidden[1..last])
            pool = read(param_ref, metas["pool"][l])
            w_bd = read(param_ref, metas["w_bd"][l])
            # Per-hop neighbor means for every hop at once (block-diag matmul).
            nei_mean = jnp.dot(pool, nei, preferred_element_type=jnp.float32)
            # relu(concat(src @ Ws, mean @ Wa)) as ONE matmul via block-diag W.
            cat = jnp.concatenate([src, nei_mean], axis=1)
            h = jnp.maximum(
                jnp.dot(cat, w_bd, preferred_element_type=jnp.float32), 0.0)
            cnts = cnts[:-1]

        # Classifier head: softmax(h @ fc_w + fc_b), exact normalization.
        fc_w = read(param_ref, metas["fc_w"])
        fc_b = read(param_ref, metas["fc_b"])
        logits = jnp.dot(h, fc_w, preferred_element_type=jnp.float32) + fc_b
        m = jnp.max(logits, axis=1, keepdims=True)
        e = jnp.exp(logits - m)
        out_ref[...] = e / jnp.sum(e, axis=1, keepdims=True)

    return kernel


def classifier_forward(node_feat_list, slab, metas, num_layers, node_counts,
                       output_dim):
    feat = jnp.concatenate([x.astype(jnp.float32) for x in node_feat_list],
                           axis=0)
    n0 = node_feat_list[0].shape[0]
    kernel = _build_fused_classifier_kernel(num_layers, node_counts, metas)
    vmem = pl.BlockSpec(memory_space=pltpu.MemorySpace.VMEM)
    return pl.pallas_call(
        kernel,
        out_shape=jax.ShapeDtypeStruct((n0, output_dim), jnp.float32),
        in_specs=[vmem, vmem],
        out_specs=vmem,
    )(feat, slab)


# ----------------------------------------------------------------------------
# Pure-JAX reference (mirrors the PyTorch module) for correctness checking
# ----------------------------------------------------------------------------
def reference_forward(node_feat_list, params, num_layers):
    hidden = list(node_feat_list)
    num_nei = [x.shape[0] for x in node_feat_list]
    for l in range(num_layers):
        conv = params["conv"][l]
        nxt = []
        for hop in range(num_layers - l):
            src = hidden[hop]
            n_src = src.shape[0]
            k = num_nei[hop + 1] // n_src
            nei = hidden[hop + 1].reshape(n_src, k, -1)
            nei_h = jnp.mean(nei, axis=1) @ conv["w_agg"]
            self_h = src @ conv["w_self"]
            nxt.append(jax.nn.relu(jnp.concatenate([self_h, nei_h], axis=1)))
        hidden = nxt
    logits = hidden[0] @ params["fc_w"] + params["fc_b"]
    return jax.nn.softmax(logits, axis=1)


# ----------------------------------------------------------------------------
# Deterministic parameters / inputs + run
# ----------------------------------------------------------------------------
def make_params(key, num_layers, input_dim, hidden_dim, output_dim):
    keys = jax.random.split(key, 2 * num_layers + 2)
    conv_params = []
    in_dim = input_dim
    for l in range(num_layers):
        w_self = 0.1 * jax.random.normal(keys[2 * l], (in_dim, hidden_dim),
                                         dtype=jnp.float32)
        w_agg = 0.1 * jax.random.normal(keys[2 * l + 1], (in_dim, hidden_dim),
                                        dtype=jnp.float32)
        conv_params.append({"w_self": w_self, "w_agg": w_agg})
        in_dim = hidden_dim * 2
    fc_w = 0.1 * jax.random.normal(keys[-2], (hidden_dim * 2, output_dim),
                                   dtype=jnp.float32)
    fc_b = 0.1 * jax.random.normal(keys[-1], (1, output_dim),
                                   dtype=jnp.float32)
    return {"conv": conv_params, "fc_w": fc_w, "fc_b": fc_b}


if __name__ == "__main__":
    num_layers = 2
    input_dim, hidden_dim, output_dim = 16, 32, 8
    n0, K = 4, 3                          # 4 seed nodes, 3 sampled neighbors/hop
    node_counts = [n0]
    for _ in range(num_layers):
        node_counts.append(node_counts[-1] * K)       # [4, 12, 36]

    root = jax.random.PRNGKey(0)
    k_in, k_par = jax.random.split(root)
    in_keys = jax.random.split(k_in, num_layers + 1)
    node_feat_list = [
        jax.random.normal(in_keys[i], (node_counts[i], input_dim),
                          dtype=jnp.float32)
        for i in range(num_layers + 1)
    ]

    params = make_params(k_par, num_layers, input_dim, hidden_dim, output_dim)
    slab, metas = prepare_inputs(params, node_counts, num_layers, hidden_dim)

    out = classifier_forward(node_feat_list, slab, metas, num_layers,
                             node_counts, output_dim)
    out = jax.block_until_ready(out)

    assert out.shape == (n0, output_dim)
    # Exact-divide softmax: rows must sum to 1 tightly.
    assert jnp.allclose(jnp.sum(out, axis=1), 1.0, atol=1e-4)
    # Match the pure-JAX reference of the original module semantics.
    ref = reference_forward(node_feat_list, params, num_layers)
    assert jnp.allclose(out, ref, rtol=1e-2, atol=1e-3), (
        float(jnp.max(jnp.abs(out - ref))))
    print("KERNEL_OK")
</pallas_src>

<mosaic_0001>
module attributes {stable_mosaic.version = 11 : i64} {
  func.func @kernel(%arg0: memref<52x16xf32, #tpu.memory_space<vmem>>, %arg1: memref<256x64xf32, #tpu.memory_space<vmem>>, %arg2: memref<4x8xf32, #tpu.memory_space<vmem>>) attributes {dimension_semantics = [], scalar_prefetch = 0 : i64, scratch_operands = 0 : i64, tpu.core_type = #tpu.core_type<tc>} {
    %c0 = arith.constant 0 : index
    %c0_0 = arith.constant 0 : index
    %0 = vector.load %arg0[%c0, %c0_0] : memref<52x16xf32, #tpu.memory_space<vmem>>, vector<52x16xf32>
    %1 = vector.extract_strided_slice %0 {offsets = [0, 0], sizes = [16, 16], strides = [1, 1]} : vector<52x16xf32> to vector<16x16xf32>
    %2 = vector.extract_strided_slice %0 {offsets = [4, 0], sizes = [48, 16], strides = [1, 1]} : vector<52x16xf32> to vector<48x16xf32>
    %c0_1 = arith.constant 0 : index
    %c0_2 = arith.constant 0 : index
    %3 = vector.load %arg1[%c0_1, %c0_2] : memref<256x64xf32, #tpu.memory_space<vmem>>, vector<16x48xf32>
    %c24 = arith.constant 24 : index
    %c0_3 = arith.constant 0 : index
    %4 = vector.load %arg1[%c24, %c0_3] : memref<256x64xf32, #tpu.memory_space<vmem>>, vector<32x64xf32>
    %cst = arith.constant dense<0.000000e+00> : vector<16x16xf32>
    %5 = tpu.matmul %3, %2, %cst {dimension_numbers = #tpu.dot_dimension_numbers<[1], [0], [0], [1], [0, 0, 1, 1], [], []>} : vector<16x48xf32>, vector<48x16xf32>, vector<16x16xf32> -> vector<16x16xf32>
    %6 = tpu.concatenate %1, %5 in 1 : vector<16x16xf32>, vector<16x16xf32> -> vector<16x32xf32>
    %cst_4 = arith.constant dense<0.000000e+00> : vector<16x64xf32>
    %7 = tpu.matmul %6, %4, %cst_4 {dimension_numbers = #tpu.dot_dimension_numbers<[1], [0], [0], [1], [0, 0, 1, 1], [], []>} : vector<16x32xf32>, vector<32x64xf32>, vector<16x64xf32> -> vector<16x64xf32>
    %cst_5 = arith.constant 0.000000e+00 : f32
    %8 = vector.broadcast %cst_5 : f32 to vector<16x64xf32>
    %9 = arith.maximumf %7, %8 : vector<16x64xf32>
    %10 = vector.extract_strided_slice %9 {offsets = [0, 0], sizes = [4, 64], strides = [1, 1]} : vector<16x64xf32> to vector<4x64xf32>
    %11 = vector.extract_strided_slice %9 {offsets = [4, 0], sizes = [12, 64], strides = [1, 1]} : vector<16x64xf32> to vector<12x64xf32>
    %c16 = arith.constant 16 : index
    %c0_6 = arith.constant 0 : index
    %12 = vector.load %arg1[%c16, %c0_6] : memref<256x64xf32, #tpu.memory_space<vmem>>, vector<4x12xf32>
    %c56 = arith.constant 56 : index
    %c0_7 = arith.constant 0 : index
    %13 = vector.load %arg1[%c56, %c0_7] : memref<256x64xf32, #tpu.memory_space<vmem>>, vector<128x64xf32>
    %cst_8 = arith.constant dense<0.000000e+00> : vector<4x64xf32>
    %14 = tpu.matmul %12, %11, %cst_8 {dimension_numbers = #tpu.dot_dimension_numbers<[1], [0], [0], [1], [0, 0, 1, 1], [], []>} : vector<4x12xf32>, vector<12x64xf32>, vector<4x64xf32> -> vector<4x64xf32>
    %15 = tpu.concatenate %10, %14 in 1 : vector<4x64xf32>, vector<4x64xf32> -> vector<4x128xf32>
    %cst_9 = arith.constant dense<0.000000e+00> : vector<4x64xf32>
    %16 = tpu.matmul %15, %13, %cst_9 {dimension_numbers = #tpu.dot_dimension_numbers<[1], [0], [0], [1], [0, 0, 1, 1], [], []>} : vector<4x128xf32>, vector<128x64xf32>, vector<4x64xf32> -> vector<4x64xf32>
    %cst_10 = arith.constant 0.000000e+00 : f32
    %17 = vector.broadcast %cst_10 : f32 to vector<4x64xf32>
    %18 = arith.maximumf %16, %17 : vector<4x64xf32>
    %c184 = arith.constant 184 : index
    %c0_11 = arith.constant 0 : index
    %19 = vector.load %arg1[%c184, %c0_11] : memref<256x64xf32, #tpu.memory_space<vmem>>, vector<64x8xf32>
    %c248 = arith.constant 248 : index
    %c0_12 = arith.constant 0 : index
    %20 = vector.load %arg1[%c248, %c0_12] : memref<256x64xf32, #tpu.memory_space<vmem>>, vector<1x8xf32>
    %cst_13 = arith.constant dense<0.000000e+00> : vector<4x8xf32>
    %21 = tpu.matmul %18, %19, %cst_13 {dimension_numbers = #tpu.dot_dimension_numbers<[1], [0], [0], [1], [0, 0, 1, 1], [], []>} : vector<4x64xf32>, vector<64x8xf32>, vector<4x8xf32> -> vector<4x8xf32>
    %22 = vector.broadcast %20 : vector<1x8xf32> to vector<4x8xf32>
    %23 = arith.addf %21, %22 : vector<4x8xf32>
    %cst_14 = arith.constant dense<0xFF800000> : vector<4xf32>
    %24 = vector.multi_reduction <maximumf>, %23, %cst_14 [1] : vector<4x8xf32> to vector<4xf32>
    %25 = vector.shape_cast %24 : vector<4xf32> to vector<4x1xf32>
    %26 = vector.broadcast %25 : vector<4x1xf32> to vector<4x8xf32>
    %27 = arith.subf %23, %26 : vector<4x8xf32>
    %28 = math.exp %27 : vector<4x8xf32>
    %cst_15 = arith.constant dense<0.000000e+00> : vector<4xf32>
    %29 = vector.multi_reduction <add>, %28, %cst_15 [1] : vector<4x8xf32> to vector<4xf32>
    %30 = vector.shape_cast %29 : vector<4xf32> to vector<4x1xf32>
    %31 = vector.broadcast %30 : vector<4x1xf32> to vector<4x8xf32>
    %32 = arith.divf %28, %31 : vector<4x8xf32>
    %c0_16 = arith.constant 0 : index
    %c0_17 = arith.constant 0 : index
    %33 = vector.load %arg2[%c0_16, %c0_17] : memref<4x8xf32, #tpu.memory_space<vmem>>, vector<4x8xf32>
    tpu.vector_store %arg2[%c0_16, %c0_17], %32 {strides = array<i32>} : memref<4x8xf32, #tpu.memory_space<vmem>>, vector<4x8xf32>,
    return
  }
}

</mosaic_0001>

<bundles_post_ra>
// kernel: tpu_custom_call.1
= control target key start
LH: loop header
LB: loop body
LE: loop exit
PB: predicated region body
PF: predicated region fallthrough
CT: control target
= control target key end

     0   :  { %vm32_vm0 = vcmask 1043456   ;;  %vm52_vm1 = vcmask 392192   ;;  %s938_s0 = inlined_call_operand.vmem [shape: f32[52,16], index: 0, kind: input, shape index: {}]   ;;  %s939_s1 = inlined_call_operand.vmem [shape: f32[256,64], index: 1, kind: input, shape index: {}]   ;;  %s940_s2 = inlined_call_operand.hbm [shape: f32[4,8], index: 2, kind: output, shape index: {}]  }
   0x1   :  { %v12_v0 = vld [vmem:[%s938_s0] sm:$0xff]  ;;  %v13_v1 = vld [vmem:[%s938_s0 + $0x8] sm:$0xff]  ;;  %v14_v2 = vld [vmem:[%s938_s0 + $0x10] sm:$0xff] }
   0x2   :  { %v33_v3 = vrot.slane %v12_v0, 4  ;;  %v34_v4 = vrot.slane %v13_v1, 4  ;;  %v36_v5 = vrot.slane %v14_v2, 4  ;;  %v15_v6 = vld [vmem:[%s938_s0 + $0x18] sm:$0xff]  ;;  %v16_v7 = vld [vmem:[%s938_s0 + $0x20] sm:$0xff]  ;;  %v17_v8 = vld [vmem:[%s938_s0 + $0x28] sm:$0xff] }
   0x3   :  { %v38_v9 = vrot.slane %v15_v6, 4  ;;  %v40_v10 = vrot.slane %v16_v7, 4  ;;  %v18_v11 = vld [vmem:[%s938_s0 + $0x30] sm:$0xf]  ;;  %v42_v12 = vrot.slane %v17_v8, 4  ;;  %v19_v13 = vld [vmem:[%s939_s1] sm:$0xff] }
   0x4   :  { %v35_v14 = vsel %vm32_vm0, %v33_v3, %v34_v4  ;;  %v37_v15 = vsel %vm32_vm0, %v34_v4, %v36_v5  ;;  %v44_v16 = vrot.slane %v18_v11, 4  ;;  %581 = vmatprep.mubr.msk.f32.mxu1 %vm52_vm1, %v19_v13 }
   0x5   :  { %7 = vsyncpa [#allocation3], 0  ;;  %v656_v17 = vpack.c.bf16 %v37_v15, %v35_v14  ;;  %v39_v18 = vsel %vm32_vm0, %v36_v5, %v38_v9  ;;  %v41_v19 = vsel %vm32_vm0, %v38_v9, %v40_v10  ;;  %v43_v21 = vsel %vm32_vm0, %v40_v10, %v42_v12  ;;  %v20_v24 = vld [vmem:[%s939_s1 + $0x8] sm:$0xff]  ;;  %v21_v25 = vld [vmem:[%s939_s1 + $0x18] sm:$0xff]  ;;  %s751_s6 = smov 16   ;;  %s756_s24 = smov 64  }
   0x6   :  { %v660_v20 = vpack.c.bf16 %v41_v19, %v39_v18  ;;  %v45_v22 = vsel %vm32_vm0, %v42_v12, %v44_v16  ;;  %v22_v26 = vld [vmem:[%s939_s1 + $0x20] sm:$0xff]  ;;  %v23_v28 = vld [vmem:[%s939_s1 + $0x28] sm:$0xff]  ;;  %v24_v29 = vld [vmem:[%s939_s1 + $0x30] sm:$0xff]  ;;  %vm142_vm2 = vcmask 130048   ;;  %vm145_vm3 = vcmask 261120   ;;  %s757_s30 = smov [#allocation2]  }
   0x7   :  { %657 = vmatprep.subr.bf16.mxu1 %v656_v17  ;;  %v664_v23 = vpack.c.bf16 %v45_v22, %v43_v21  ;;  %v668_v27 = vpack.c.bf16 %v22_v26, %v21_v25  ;;  %v672_v30 = vpack.c.bf16 %v24_v29, %v23_v28  ;;  %v752_v37 = vmov 0.0|0.0   ;;  %v229_v47 = vld [vmem:[%s939_s1 + $0x10] sm:$0xf]  ;;  %v230_v48 = vld [vmem:[%s939_s1 + $0x38] sm:$0xff]  ;;  %v231_v49 = vld [vmem:[%s939_s1 + $0x40] sm:$0xff]  ;;  %s510_s3 = sshll.u32 %s757_s30, 4  ;;  %s511_s3 = int_to_ptr.vmem [resolvable:$true] %s510_s3 }
   0x8   :  { %659 = vmatpush3.bf16.msra.mxu1 %v656_v17  ;;  %676 = vmatprep.subr.bf16.mxu0 %v752_v37  ;;  %vm753_vm4 = vmmov 0   ;;  %v754_v38 = vmov 0.0   ;;  %vm755_vm5 = vmmov 1   ;;  %vm252_vm7 = vcmask 97280   ;;  %v232_v50 = vld [vmem:[%s939_s1 + $0x48] sm:$0xff]  ;;  %v233_v52 = vld [vmem:[%s939_s1 + $0x50] sm:$0xff]  ;;  %p732_p1 = scmp.lt.s32.totalorder %s511_s3, %s511_s3 }
   0x9   :  { %661 = vmatprep.subr.bf16.mxu1 %v660_v20  ;;  %599 = vmatprep.mubr.msk.f32.mxu0 %vm753_vm4, %v754_v38  ;;  %vm678_vm6 = vmpackc.low %vm32_vm0, %vm755_vm5  ;;  %v681_v51 = vpack.c.bf16 %v231_v49, %v230_v48  ;;  %v684_v53 = vpack.c.bf16 %v233_v52, %v232_v50  ;;  %v234_v54 = vld [vmem:[%s939_s1 + $0x58] sm:$0xff]  ;;  %v235_v55 = vld [vmem:[%s939_s1 + $0x60] sm:$0xff]  ;;  %vm332_vm8 = vcmask 523264   ;;  %vm491_vm9 = vcmask 60416  }
   0xa   :  { %v687_v56 = vpack.c.bf16 %v235_v55, %v234_v54  ;;  %v236_v57 = vld [vmem:[%s939_s1 + $0x68] sm:$0xff]  ;;  %v237_v58 = vld [vmem:[%s939_s1 + $0x70] sm:$0xff]  ;;  %v238_v60 = vld [vmem:[%s939_s1 + $0x78] sm:$0xff] }
   0xb   :  { %v690_v59 = vpack.c.bf16 %v237_v58, %v236_v57  ;;  %v239_v61 = vld [vmem:[%s939_s1 + $0x80] sm:$0xff]  ;;  %v240_v63 = vld [vmem:[%s939_s1 + $0x88] sm:$0xff]  ;;  %v242_v2 = vld [vmem:[%s939_s1 + $0x98] sm:$0xff] }
   0xc   :  { %663 = vmatpush3.bf16.msra.mxu1 %v660_v20  ;;  %v693_v62 = vpack.c.bf16 %v239_v61, %v238_v60  ;;  %v243_v3 = vld [vmem:[%s939_s1 + $0xa0] sm:$0xff]  ;;  %v244_v5 = vld [vmem:[%s939_s1 + $0xa8] sm:$0xff]  ;;  %v245_v6 = vld [vmem:[%s939_s1 + $0xb0] sm:$0xff] }
   0xd   :  { %665 = vmatprep.subr.bf16.mxu1 %v664_v23  ;;  %v699_v4 = vpack.c.bf16 %v243_v3, %v242_v2  ;;  %v702_v7 = vpack.c.bf16 %v245_v6, %v244_v5  ;;  %v405_v8 = vld [vmem:[%s939_s1 + $0xb8] sm:$0xff]  ;;  %v406_v9 = vld [vmem:[%s939_s1 + $0xc0] sm:$0xff]  ;;  %v407_v10 = vld [vmem:[%s939_s1 + $0xc8] sm:$0xff] }
   0xe   :  { %v705_v11 = vpack.c.bf16 %v406_v9, %v405_v8  ;;  %v408_v12 = vld [vmem:[%s939_s1 + $0xd0] sm:$0xff]  ;;  %v409_v14 = vld [vmem:[%s939_s1 + $0xd8] sm:$0xff]  ;;  %v410_v15 = vld [vmem:[%s939_s1 + $0xe0] sm:$0xff] }
   0xf   :  { %v708_v13 = vpack.c.bf16 %v408_v12, %v407_v10  ;;  %v711_v16 = vpack.c.bf16 %v410_v15, %v409_v14  ;;  %v411_v21 = vld [vmem:[%s939_s1 + $0xe8] sm:$0xff]  ;;  %v412_v22 = vld [vmem:[%s939_s1 + $0xf0] sm:$0xff] }
  0x10   :  { %667 = vmatpush3.bf16.msra.mxu1 %v664_v23  ;;  %v714_v23 = vpack.c.bf16 %v412_v22, %v411_v21 }
  0x11   :  { %669 = vmatprep.subr.bf16.mxu1 %v668_v27 }
  0x13   :  { %582 = vmatmul.mubr.msk.f32.vlgmr.msra.gmra.mrb[0].mxu1 %vm52_vm1, %v20_v24 }
  0x14   :  { %671 = vmatpush3.bf16.msra.mxu1 %v668_v27  ;;  %v524_v27 = vld [vmem:[%s939_s1 + $0xf8] ss:$0 sm:$0xff] }
  0x15   :  { %673 = vmatprep.subr.bf16.mxu1 %v672_v30 }
  0x18   :  { %675 = vmatpush3.bf16.msra.mxu1 %v672_v30 }
  0x19   :  { %704 = vmatprep.subr.bf16.mxu1 %v752_v37 }
  0xe6   :  { %v583_v31 = vpop.f32.mrb[0].mxu1 }
  0xe7   :  { %v125_v32 = vpop.f32.mrb[1].mxu1 }
  0xe8   :  { %136 = vrot.lane.b32.xlu0 %v125_v32, %s751_s6 }
  0xec   :  { %138 = vrot.lane.b32.xlu0 %v583_v31, %s751_s6 }
 0x15a   :  { %v137_v33 = vpop.permute.xlu0 %136 }
 0x15b   :  { %v143_v34 = vsel %vm142_vm2, %v12_v0, %v137_v33  ;;  %v241_v0 = vld [vmem:[%s939_s1 + $0x90] sm:$0xff]  ;;  %s727_s1 = scalar_lea.vmem %s511_s3, 64 }
 0x15c   :  { %592 = vmatprep.mubr.msk.f32.mxu1 %vm145_vm3, %v143_v34  ;;  %p728_p0 = scmp.ne.s32.totalorder %s511_s3, %s727_s1  ;;  %p733_p2 = scmp.lt.s32.totalorder %s727_s1, %s727_s1 }
 0x15e   :  { %v139_v35 = vpop.permute.xlu0 %138  ;;  %p734_p3 = por %p733_p2, %p732_p1 }
 0x15f   :  { %v144_v36 = vsel %vm142_vm2, %v13_v1, %v139_v35  ;;  %v696_v1 = vpack.c.bf16 %v241_v0, %v240_v63 }
 0x160   :  { %593 = vmatmul.mubr.msk.f32.vlgmr.msra.gmra.mrb[2].mxu1 %vm145_vm3, %v144_v36  ;;  %p735_p4 = pnand %p734_p3, %p728_p0 }
 0x161   :  { %653 = vmatprep.mubr.msk.f32.mxu1 %vm753_vm4, %v754_v38  ;;  %706 = vmatpush3.bf16.msra.mxu1 %v705_v11 }
 0x162   :  { %707 = vmatprep.subr.bf16.mxu1 %v752_v37 }
 0x165   :  { %709 = vmatpush3.bf16.msra.mxu1 %v708_v13 }
 0x166   :  { %710 = vmatprep.subr.bf16.mxu1 %v752_v37 }
 0x169   :  { %712 = vmatpush3.bf16.msra.mxu1 %v711_v16 }
 0x16a   :  { %713 = vmatprep.subr.bf16.mxu1 %v752_v37 }
 0x16d   :  { %715 = vmatpush3.bf16.msra.mxu1 %v714_v23 }
 0x233   :  { %v594_v39 = vpop.f32.mrb[2].mxu1 }
 0x234   :  { %v228_v40 = vmax.f32 %v594_v39, 0.0  ;;  %v824_v41 = vpop.f32.mrb[3].mxu1 }
 0x235   :  { %v227_v42 = vmax.f32 %v824_v41, 0.0 }
 0x236   :  { %v249_v43 = vrot.slane %v228_v40, 4 }
 0x237   :  { %v248_v44 = vrot.slane %v227_v42, 4 }
 0x239   :  { %v250_v45 = vsel %vm32_vm0, %v248_v44, %v249_v43 }
 0x23a   :  { %v677_v46 = vpack.c.bf16 %v249_v43, %v250_v45 }
 0x23c   :  { %679 = vmatpush3.bf16.msk.msra.mxu0 %vm678_vm6, %v677_v46 }
 0x23d   :  { %680 = vmatprep.subr.bf16.mxu0 %v752_v37 }
 0x23f   :  { %600 = vmatmul.mubr.msk.f32.vlgmr.msra.gmra.mrb[0].mxu0 %vm252_vm7, %v229_v47 }
 0x240   :  { %634 = vmatprep.mubr.msk.f32.mxu0 %vm753_vm4, %v754_v38  ;;  %682 = vmatpush3.bf16.msra.mxu0 %v681_v51 }
 0x241   :  { %683 = vmatprep.subr.bf16.mxu0 %v752_v37 }
 0x244   :  { %685 = vmatpush3.bf16.msra.mxu0 %v684_v53 }
 0x245   :  { %686 = vmatprep.subr.bf16.mxu0 %v752_v37 }
 0x248   :  { %688 = vmatpush3.bf16.msra.mxu0 %v687_v56 }
 0x249   :  { %689 = vmatprep.subr.bf16.mxu0 %v752_v37 }
 0x24c   :  { %691 = vmatpush3.bf16.msra.mxu0 %v690_v59 }
 0x24d   :  { %692 = vmatprep.subr.bf16.mxu0 %v752_v37 }
 0x250   :  { %694 = vmatpush3.bf16.msra.mxu0 %v693_v62 }
 0x251   :  { %695 = vmatprep.subr.bf16.mxu0 %v752_v37 }
 0x254   :  { %697 = vmatpush3.bf16.msra.mxu0 %v696_v1 }
 0x255   :  { %698 = vmatprep.subr.bf16.mxu0 %v752_v37 }
 0x258   :  { %700 = vmatpush3.bf16.msra.mxu0 %v699_v4 }
 0x259   :  { %701 = vmatprep.subr.bf16.mxu0 %v752_v37 }
 0x25c   :  { %703 = vmatpush3.bf16.msra.mxu0 %v702_v7 }
 0x312   :  { %v324_v17 = vpop.f32.mrb[0].mxu0 }
 0x313   :  { %329 = vrot.lane.b32.xlu1 %v324_v17, %s756_s24  ;;  %v601_v18 = vpop.f32.mrb[1].mxu0 }
 0x385   :  { %v330_v19 = vpop.permute.xlu1 %329 }
 0x386   :  { %v333_v20 = vsel %vm332_vm8, %v227_v42, %v330_v19 }
 0x387   :  { %635 = vmatmul.mubr.f32.vlgmr.msra.gmra.mrb[2].mxu0 %v333_v20 }
 0x45a   :  { %v400_v24 = vpop.f32.mrb[2].mxu0 }
 0x45b   :  { %v404_v25 = vmax.f32 %v400_v24, 0.0  ;;  %v636_v26 = vpop.f32.mrb[3].mxu0 }
 0x45d   :  { %654 = vmatmul.mubr.msk.f32.vlgmr.msra.gmra.mrb[4].mxu1 %vm332_vm8, %v404_v25 }
 0x530   :  { %v487_v28 = vpop.f32.mrb[4].mxu1 }
 0x531   :  { %v488_v29 = vadd.f32 %v524_v27, %v487_v28  ;;  %v655_v30 = vpop.f32.mrb[5].mxu1 }
 0x533   :  { %v492_v31 = vsel %vm491_vm9, %v488_v29, -inf }
 0x534   :  { %493 = vmax.xlane.f32.xlu1 %v492_v31 }
 0x5c1   :  { %v494_v32 = vpop.xlane.xlu1 %493 }
 0x5c2   :  { %v495_v33 = vsub.f32 %v488_v29, %v494_v32 }
 0x5c4   :  { %v496_v34 = vmul.f32 1.442695, %v495_v33 }
 0x5c6   :  { %723 = vpow2.f32 %v496_v34 }
 0x5d0   :  { %v724_v35 = vpop.eup %723 }
 0x5d1   :  { %v498_v36 = vsel %vm491_vm9, %v724_v35, 0.0 }
 0x5d2   :  { %499 = vadd.xlane.f32.xlu0 %v498_v36 }
 0x65f   :  { %v500_v37 = vpop.xlane.xlu0 %499 }
 0x660   :  { %725 = vrcp.f32 %v500_v37 }
 0x66a   :  { %v726_v38 = vpop.eup %725 }
 0x66b   :  { %v502_v39 = vmul.f32 %v726_v38, %v724_v35 }
 0x66d   :  { %503 = vst.msk [vmem:[#allocation2] sm:$0xf] %vm491_vm9, %v502_v39 }
 0x66e   :  { %738 = shalt.err (!%p735_p4)
}
 0x66f   :  { %s739_s6 = scalar_lea.hbm %s940_s2, 64 }
 0x670   :  { %p740_p5 = scmp.ne.s32.totalorder %s940_s2, %s739_s6  ;;  %p743_p6 = scmp.lt.u32.totalorder %s739_s6, %s940_s2 }
 0x672   :  { %p745_p7 = pnand %p743_p6, %p740_p5 }
 0x674   :  { %748 = shalt.err (!%p745_p7)
}
 0x675   :  { %513 = dma.vmem_to_hbm [thread:$0]  %s511_s3, 64, %s940_s2, [#allocation3]  }
 0x676   :  { %749 = dma.done.wait [#allocation3], 64  }
 0x677   :  { %750 = vsyncadd [#allocation3], 4294967232 }
 0x678   :  { %517 = vsyncpa [#allocation3], 1 }

</bundles_post_ra>
